<compile_context>
chip_gen: v7x
topology: tpu7x:2x2x1
jax: 0.10.0
libtpu: 0.0.40
codegen_flags: <defaults>
</compile_context>

<pallas_src>
import functools

import jax
import jax.numpy as jnp
from jax import lax
from jax.experimental import pallas as pl
from jax.experimental.pallas import tpu as pltpu


# ----------------------------------------------------------------------------
# helpers
# ----------------------------------------------------------------------------
def _round_up(x, m):
    return (x + m - 1) // m * m


def _sublane_multiple(dtype):
    isz = jnp.dtype(dtype).itemsize
    if isz >= 4:
        return 8
    if isz == 2:
        return 16
    return 32


def _vmem_budget_bytes():
    """~75% of physical VMEM: leaves headroom for Mosaic internal scratch."""
    try:
        phys = int(pltpu.get_tpu_info().vmem_capacity_bytes)
    except Exception:
        phys = 64 << 20            # conservative default (v7x per-TensorCore)
    return max(min((phys * 3) // 4, 100 << 20), 12 << 20)


def _pad2d(x, rows, cols):
    r, c = x.shape
    if r == rows and c == cols:
        return x
    return jnp.pad(x, ((0, rows - r), (0, cols - c)))


def _divisor_tiles(padded, step, cap=None):
    """Descending tile sizes (multiples of `step`) that divide `padded`."""
    top = padded if cap is None else min(padded, cap)
    out = []
    t = (top // step) * step
    while t >= step:
        if padded % t == 0:
            out.append(t)
        t -= step
    return out or [padded]


def _select_main_tiles(nnp, dp, nbp, wp, sub, in_isz, w_isz, budget):
    nn_cands = _divisor_tiles(nnp, sub, cap=512)
    w_cands = _divisor_tiles(wp, 128)

    def resident(tn, tw):
        return (2 * tn * dp * in_isz          # novel tile (double-buffered)
                + dp * nbp * in_isz           # base^T (single-buffered)
                + 2 * nbp * tw * w_isz        # weight W tile (double-buffered)
                + 2 * tn * tw * 4             # f32 output tile (double-buffered)
                + tn * nbp * w_isz            # probs scratch (weight dtype)
                + 2 * tn * nbp * 4)           # f32 scores / exp temporaries

    # Prefer the widest lane-dense W tile (fewer grid steps, unmasked vst,
    # full MXU N), then the tallest Nn tile that still fits the VMEM budget.
    pick = (nn_cands[-1], w_cands[-1])
    done = False
    for tw in w_cands:
        for tn in nn_cands:
            if resident(tn, tw) <= budget:
                pick = (tn, tw)
                done = True
                break
        if done:
            break
    tn, tw = pick

    # If everything collapsed to a single (Nn, W) tile, try splitting W into
    # >=2 tiles of >=256 lanes so a second TensorCore (v7x megacore) can take
    # half of the dominant probs @ base_weight matmul.  W=640 has no such
    # divisor, so the canonical case stays fully fused (review item #1).
    if nnp // tn == 1 and wp // tw == 1:
        for tw2 in w_cands:
            if 256 <= tw2 < wp and resident(tn, tw2) <= budget:
                tw = tw2
                break
    return tn, tw


# ----------------------------------------------------------------------------
# Kernel 1: main path  (matmul -> optional diag mask -> /temp -> softmax -> matmul)
# grid = (Nn_tiles, W_tiles)
#   reuse=True  : probs computed once per Nn tile (j==0) into a VMEM scratch
#   reuse=False : single Nn tile -> probs recomputed per W tile, fully parallel
# ----------------------------------------------------------------------------
def _langpuller_kernel(novel_ref, baseT_ref, weight_ref, out_ref, *scratch,
                       inv_temp, mask, nb_valid, tile_nn, reuse, w_dtype):
    # program_id must be read at the kernel top level (NEVER inside a pl.when
    # closure), otherwise it ends up inside a cond branch jaxpr.
    i = pl.program_id(0)
    j = pl.program_id(1)

    def compute_probs():
        # base_embeds was transposed wrapper-side to [D, Nb]: canonical
        # lhs-last x rhs-first contraction, no in-kernel XLU transpose.
        scores = lax.dot_general(
            novel_ref[...], baseT_ref[...],
            dimension_numbers=(((1,), (0,)), ((), ())),
            preferred_element_type=jnp.float32,
        )
        if mask:
            row = lax.broadcasted_iota(jnp.int32, scores.shape, 0) + i * tile_nn
            col = lax.broadcasted_iota(jnp.int32, scores.shape, 1)
            scores = jnp.where(row == col, jnp.float32(-9999.0), scores)
        # torch order: fill_diagonal_(-9999) happens BEFORE the /temperature.
        scores = scores * jnp.float32(inv_temp)
        if nb_valid < scores.shape[1]:
            # padded base-class columns must get zero probability
            col = lax.broadcasted_iota(jnp.int32, scores.shape, 1)
            scores = jnp.where(col >= nb_valid, jnp.float32(-1e30), scores)

        # Row-wise softmax, all in f32.
        m = jnp.max(scores, axis=1, keepdims=True)
        e = jnp.exp(scores - m)
        denom = jnp.sum(e, axis=1, keepdims=True)
        r = pl.reciprocal(denom, approx=True)          # EUP slot (cheap)
        r = r * (2.0 - denom * r)                      # one NR step -> f32 accuracy
        # Cast once to the weight dtype (MXU LHS for the second matmul).
        return (e * r).astype(w_dtype)

    if reuse:
        probs_ref = scratch[0]

        @pl.when(j == 0)
        def _():
            probs_ref[...] = compute_probs()

        probs = probs_ref[...]
    else:
        probs = compute_probs()

    # FLOP-dominant matmul for this W tile: probs @ base_weight_tile.
    out_ref[...] = jnp.dot(
        probs, weight_ref[...], preferred_element_type=jnp.float32
    ).astype(out_ref.dtype)


def lang_puller_forward(novel_embeds, base_embeds, base_weight,
                        temperature=1.0, mask=False, *, _force_tiles=None):
    """LangPuller.forward with mapping_model is None."""
    nn_, d = novel_embeds.shape
    nb_, d2 = base_embeds.shape
    nb2, w = base_weight.shape
    assert d == d2 and nb_ == nb2

    sub = _sublane_multiple(novel_embeds.dtype)      # dtype-aware sublane rounding
    dp = _round_up(d, 128)
    nbp = _round_up(nb_, 128)
    wp = _round_up(w, 128)
    nnp = _round_up(nn_, sub)

    in_isz = jnp.dtype(novel_embeds.dtype).itemsize
    w_dtype = base_weight.dtype
    w_isz = jnp.dtype(w_dtype).itemsize

    budget = _vmem_budget_bytes()
    if _force_tiles is not None:                     # testing hook
        tile_nn, tile_w = _force_tiles
        assert nnp % tile_nn == 0 and wp % tile_w == 0
        assert tile_nn % sub == 0 and tile_w % 128 == 0
    else:
        tile_nn, tile_w = _select_main_tiles(nnp, dp, nbp, wp, sub,
                                             in_isz, w_isz, budget)
    n_nn, n_w = nnp // tile_nn, wp // tile_w
    reuse = n_nn > 1                                 # probs reused across W tiles

    novel_p = _pad2d(novel_embeds, nnp, dp)
    baseT_p = _pad2d(base_embeds.T, dp, nbp)         # transpose once, wrapper-side
    weight_p = _pad2d(base_weight, nbp, wp)

    kernel = functools.partial(
        _langpuller_kernel,
        inv_temp=1.0 / float(temperature),
        mask=bool(mask),
        nb_valid=int(nb_),
        tile_nn=int(tile_nn),
        reuse=reuse,
        w_dtype=w_dtype,
    )

    in_specs = [
        pl.BlockSpec((tile_nn, dp), lambda i, j: (i, 0)),            # novel tile
        # base^T never changes -> single-buffered (halves its VMEM footprint).
        pl.BlockSpec((dp, nbp), lambda i, j: (0, 0),
                     pipeline_mode=pl.Buffered(1)),
        pl.BlockSpec((nbp, tile_w), lambda i, j: (0, j)),            # weight W tile
    ]
    scratch = [pltpu.VMEM((tile_nn, nbp), w_dtype)] if reuse else []
    # reuse: the W axis carries the probs scratch -> "arbitrary".
    # single Nn tile: probs recomputed per W tile -> both axes independent and
    # "parallel", letting a megacore split the dominant matmul.
    semantics = ("parallel", "arbitrary") if reuse else ("parallel", "parallel")

    cost = pl.CostEstimate(
        flops=int(2 * nnp * nbp * dp * (1 if reuse else n_w) + 2 * nnp * nbp * wp),
        transcendentals=int(nnp * nbp * (1 if reuse else n_w)),
        bytes_accessed=int(novel_p.size * in_isz + baseT_p.size * in_isz
                           + weight_p.size * w_isz + nnp * wp * 4),
    )

    out_p = pl.pallas_call(
        kernel,
        out_shape=jax.ShapeDtypeStruct((nnp, wp), jnp.float32),
        grid_spec=pltpu.PrefetchScalarGridSpec(
            num_scalar_prefetch=0,
            grid=(n_nn, n_w),
            in_specs=in_specs,
            out_specs=pl.BlockSpec((tile_nn, tile_w), lambda i, j: (i, j)),
            scratch_shapes=scratch,
        ),
        compiler_params=pltpu.CompilerParams(
            dimension_semantics=semantics,
            vmem_limit_bytes=int(budget),
        ),
        cost_estimate=cost,
    )(novel_p, baseT_p, weight_p)

    return out_p[:nn_, :w]


# ----------------------------------------------------------------------------
# Kernel 2: mapping path (LinearMap: nn.Linear(indim, outdim))
# ----------------------------------------------------------------------------
def _linearmap_kernel(x_ref, wt_ref, b_ref, out_ref):
    # Weight was transposed once in the wrapper -> canonical MXU contraction.
    y = lax.dot_general(
        x_ref[...], wt_ref[...],
        dimension_numbers=(((1,), (0,)), ((), ())),
        preferred_element_type=jnp.float32,
    )
    out_ref[...] = (y + b_ref[...].astype(jnp.float32)).astype(out_ref.dtype)


def lang_puller_mapping_forward(novel_embeds, map_weight, map_bias):
    """LangPuller.forward when mapping_model (LinearMap) is set."""
    nn_, indim = novel_embeds.shape
    outdim, indim2 = map_weight.shape
    assert indim == indim2
    assert map_bias.shape == (outdim,)

    sub = _sublane_multiple(novel_embeds.dtype)
    indp = _round_up(indim, 128)
    outp = _round_up(outdim, 128)
    nnp = _round_up(nn_, sub)

    x_isz = jnp.dtype(novel_embeds.dtype).itemsize
    w_isz = jnp.dtype(map_weight.dtype).itemsize
    budget = _vmem_budget_bytes()

    # Largest tiles that fit the VMEM budget (usually the full padded arrays).
    nn_cands = _divisor_tiles(nnp, sub, cap=512)
    out_cands = _divisor_tiles(outp, 128)
    tile_nn, tile_out = nn_cands[-1], out_cands[-1]
    found = False
    for to in out_cands:
        for tn in nn_cands:
            res = (2 * tn * indp * x_isz + 2 * indp * to * w_isz
                   + 2 * to * 4 + 2 * tn * to * 4)
            if res <= budget:
                tile_nn, tile_out = tn, to
                found = True
                break
        if found:
            break
    grid = (nnp // tile_nn, outp // tile_out)

    x_p = _pad2d(novel_embeds, nnp, indp)
    wt_p = _pad2d(map_weight.T, indp, outp)          # transpose once, wrapper-side
    b_p = _pad2d(map_bias.reshape(1, outdim), 1, outp)

    cost = pl.CostEstimate(
        flops=int(2 * nnp * indp * outp),
        transcendentals=0,
        bytes_accessed=int(x_p.size * x_isz + wt_p.size * w_isz + nnp * outp * 4),
    )

    out_p = pl.pallas_call(
        _linearmap_kernel,
        out_shape=jax.ShapeDtypeStruct((nnp, outp), jnp.float32),
        grid_spec=pltpu.PrefetchScalarGridSpec(
            num_scalar_prefetch=0,
            grid=grid,
            in_specs=[
                pl.BlockSpec((tile_nn, indp), lambda i, j: (i, 0)),
                pl.BlockSpec((indp, tile_out), lambda i, j: (0, j)),
                pl.BlockSpec((1, tile_out), lambda i, j: (0, j)),
            ],
            out_specs=pl.BlockSpec((tile_nn, tile_out), lambda i, j: (i, j)),
        ),
        compiler_params=pltpu.CompilerParams(
            dimension_semantics=("parallel", "parallel"),
            vmem_limit_bytes=int(budget),
        ),
        cost_estimate=cost,
    )(x_p, wt_p, b_p)

    return out_p[:nn_, :outdim]


# ----------------------------------------------------------------------------
# Pure-JAX references for verification
# ----------------------------------------------------------------------------
def _ref_forward(novel, base, base_weight, temp, mask):
    scores = novel @ base.T
    if mask:
        n = min(scores.shape)
        idx = jnp.arange(n)
        scores = scores.at[idx, idx].set(-9999.0)
    probs = jax.nn.softmax(scores / temp, axis=1)
    return probs @ base_weight


def _ref_mapping(novel, w, b):
    return novel @ w.T + b


if __name__ == "__main__":
    # Shapes consistent with the module: Nn novel classes, Nb base classes,
    # D word-embedding dim, W = base classifier weight dim (default 640).
    Nn, Nb, D, W = 8, 16, 32, 640
    TEMP = 5.0

    key = jax.random.PRNGKey(0)
    k1, k2, k3, k4, k5, k6, k7, k8 = jax.random.split(key, 8)

    novel_embeds = jax.random.normal(k1, (Nn, D), dtype=jnp.float32)
    base_embeds = jax.random.normal(k2, (Nb, D), dtype=jnp.float32)
    base_weight = jax.random.normal(k3, (Nb, W), dtype=jnp.float32)

    # 1) Fast path: single fused block (the realistic LangPuller case),
    #    with and without the diagonal mask.
    out_nomask = jax.block_until_ready(
        lang_puller_forward(novel_embeds, base_embeds, base_weight, TEMP, mask=False))
    out_mask = jax.block_until_ready(
        lang_puller_forward(novel_embeds, base_embeds, base_weight, TEMP, mask=True))
    ref_nomask = _ref_forward(novel_embeds, base_embeds, base_weight, TEMP, False)
    ref_mask = _ref_forward(novel_embeds, base_embeds, base_weight, TEMP, True)
    assert jnp.allclose(out_nomask, ref_nomask, atol=2e-3, rtol=2e-3)
    assert jnp.allclose(out_mask, ref_mask, atol=2e-3, rtol=2e-3)

    # 2) Tiled path, multiple Nn tiles -> probs scratch reused across W tiles.
    Nn2, Nb2, D2 = 32, 24, 48
    novel2 = jax.random.normal(k4, (Nn2, D2), dtype=jnp.float32)
    base2 = jax.random.normal(k5, (Nb2, D2), dtype=jnp.float32)
    base_w2 = jax.random.normal(k6, (Nb2, W), dtype=jnp.float32)
    out_tiled = jax.block_until_ready(
        lang_puller_forward(novel2, base2, base_w2, TEMP, mask=False,
                            _force_tiles=(8, 128)))
    ref_tiled = _ref_forward(novel2, base2, base_w2, TEMP, False)
    assert jnp.allclose(out_tiled, ref_tiled, atol=2e-3, rtol=2e-3)

    # 3) Tiled path, single Nn tile -> probs recomputed per W tile (parallel W).
    out_recomp = jax.block_until_ready(
        lang_puller_forward(novel_embeds, base_embeds, base_weight, TEMP, mask=True,
                            _force_tiles=(8, 128)))
    assert jnp.allclose(out_recomp, ref_mask, atol=2e-3, rtol=2e-3)

    # 4) Mapping path (after create_pulling_mapping): nn.Linear(D, W).
    map_weight = 0.05 * jax.random.normal(k7, (W, D), dtype=jnp.float32)
    map_bias = 0.01 * jax.random.normal(k8, (W,), dtype=jnp.float32)
    out_map = jax.block_until_ready(
        lang_puller_mapping_forward(novel_embeds, map_weight, map_bias))
    ref_map = _ref_mapping(novel_embeds, map_weight, map_bias)
    assert jnp.allclose(out_map, ref_map, atol=1e-4, rtol=1e-4)

    print("KERNEL_OK")
</pallas_src>

<mosaic_0001>
module attributes {stable_mosaic.version = 11 : i64} {
  func.func @_langpuller_kernel(%arg0: i32, %arg1: i32, %arg2: memref<8x128xf32, #tpu.memory_space<vmem>>, %arg3: memref<128x128xf32, #tpu.memory_space<vmem>>, %arg4: memref<128x640xf32, #tpu.memory_space<vmem>>, %arg5: memref<8x640xf32, #tpu.memory_space<vmem>>) attributes {dimension_semantics = [#tpu.dimension_semantics<parallel>, #tpu.dimension_semantics<parallel>], iteration_bounds = array<i64: 1, 1>, scalar_prefetch = 0 : i64, scratch_operands = 0 : i64, tpu.core_type = #tpu.core_type<tc>, window_params = [{transform_indices = @transform_0, window_bounds = array<i64: 8, 128>}, {pipeline_mode = #tpu.pipeline_mode<synchronous>, transform_indices = @transform_1, window_bounds = array<i64: 128, 128>}, {transform_indices = @transform_2, window_bounds = array<i64: 128, 640>}, {transform_indices = @transform_3, window_bounds = array<i64: 8, 640>}]} {
    %c0 = arith.constant 0 : index
    %c0_0 = arith.constant 0 : index
    %0 = vector.load %arg2[%c0, %c0_0] : memref<8x128xf32, #tpu.memory_space<vmem>>, vector<8x128xf32>
    %c0_1 = arith.constant 0 : index
    %c0_2 = arith.constant 0 : index
    %1 = vector.load %arg3[%c0_1, %c0_2] : memref<128x128xf32, #tpu.memory_space<vmem>>, vector<128x128xf32>
    %cst = arith.constant dense<0.000000e+00> : vector<8x128xf32>
    %2 = tpu.matmul %0, %1, %cst {dimension_numbers = #tpu.dot_dimension_numbers<[1], [0], [0], [1], [0, 0, 1, 1], [], []>} : vector<8x128xf32>, vector<128x128xf32>, vector<8x128xf32> -> vector<8x128xf32>
    %cst_3 = arith.constant 2.000000e-01 : f32
    %3 = vector.broadcast %cst_3 : f32 to vector<8x128xf32>
    %4 = arith.mulf %2, %3 : vector<8x128xf32>
    %5 = tpu.iota {dimensions = array<i32: 1>} : vector<8x128xi32>
    %c16_i32 = arith.constant 16 : i32
    %6 = vector.broadcast %c16_i32 : i32 to vector<8x128xi32>
    %7 = arith.cmpi sge, %5, %6 : vector<8x128xi32>
    %cst_4 = arith.constant -1.000000e+30 : f32
    %8 = vector.broadcast %cst_4 : f32 to vector<8x128xf32>
    %9 = arith.select %7, %8, %4 : vector<8x128xi1>, vector<8x128xf32>
    %cst_5 = arith.constant dense<0xFF800000> : vector<8xf32>
    %10 = vector.multi_reduction <maximumf>, %9, %cst_5 [1] : vector<8x128xf32> to vector<8xf32>
    %11 = vector.shape_cast %10 : vector<8xf32> to vector<8x1xf32>
    %12 = vector.broadcast %11 : vector<8x1xf32> to vector<8x128xf32>
    %13 = arith.subf %9, %12 : vector<8x128xf32>
    %14 = math.exp %13 : vector<8x128xf32>
    %cst_6 = arith.constant dense<0.000000e+00> : vector<8xf32>
    %15 = vector.multi_reduction <add>, %14, %cst_6 [1] : vector<8x128xf32> to vector<8xf32>
    %16 = vector.shape_cast %15 : vector<8xf32> to vector<8x1xf32>
    %17 = tpu.reciprocal %16 {approx = true} : vector<8x1xf32> -> vector<8x1xf32>
    %18 = arith.mulf %16, %17 : vector<8x1xf32>
    %cst_7 = arith.constant 2.000000e+00 : f32
    %19 = vector.broadcast %cst_7 : f32 to vector<8x1xf32>
    %20 = arith.subf %19, %18 : vector<8x1xf32>
    %21 = arith.mulf %17, %20 : vector<8x1xf32>
    %22 = vector.broadcast %21 : vector<8x1xf32> to vector<8x128xf32>
    %23 = arith.mulf %14, %22 : vector<8x128xf32>
    %c0_8 = arith.constant 0 : index
    %c0_9 = arith.constant 0 : index
    %24 = vector.load %arg4[%c0_8, %c0_9] : memref<128x640xf32, #tpu.memory_space<vmem>>, vector<128x640xf32>
    %cst_10 = arith.constant dense<0.000000e+00> : vector<8x640xf32>
    %25 = tpu.matmul %23, %24, %cst_10 {dimension_numbers = #tpu.dot_dimension_numbers<[1], [0], [0], [1], [0, 0, 1, 1], [], []>} : vector<8x128xf32>, vector<128x640xf32>, vector<8x640xf32> -> vector<8x640xf32>
    %c0_11 = arith.constant 0 : index
    %c0_12 = arith.constant 0 : index
    %26 = vector.load %arg5[%c0_11, %c0_12] : memref<8x640xf32, #tpu.memory_space<vmem>>, vector<8x640xf32>
    tpu.vector_store %arg5[%c0_11, %c0_12], %25 {strides = array<i32>} : memref<8x640xf32, #tpu.memory_space<vmem>>, vector<8x640xf32>,
    return
  }
  func.func @transform_0(%arg0: i32, %arg1: i32) -> (i32, i32) {
    %c0_i32 = arith.constant 0 : i32
    %c0_i32_0 = arith.constant 0 : i32
    return %arg0, %c0_i32 : i32, i32
  }
  func.func @transform_1(%arg0: i32, %arg1: i32) -> (i32, i32) {
    %c0_i32 = arith.constant 0 : i32
    %c0_i32_0 = arith.constant 0 : i32
    %c0_i32_1 = arith.constant 0 : i32
    return %c0_i32, %c0_i32_0 : i32, i32
  }
  func.func @transform_2(%arg0: i32, %arg1: i32) -> (i32, i32) {
    %c0_i32 = arith.constant 0 : i32
    %c0_i32_0 = arith.constant 0 : i32
    return %c0_i32, %arg1 : i32, i32
  }
  func.func @transform_3(%arg0: i32, %arg1: i32) -> (i32, i32) {
    %c0_i32 = arith.constant 0 : i32
    return %arg0, %arg1 : i32, i32
  }
}

</mosaic_0001>

<bundles_post_ra>
// kernel: tpu_custom_call.1
= control target key start
LH: loop header
LB: loop body
LE: loop exit
PB: predicated region body
PF: predicated region fallthrough
CT: control target
= control target key end

     0   :  { %8 = vsyncpa [#allocation3], 0  ;;  %s905_s0 = inlined_call_operand.hbm [shape: f32[8,128], index: 0, kind: input, shape index: {}]   ;;  %s906_s1 = inlined_call_operand.hbm [shape: f32[128,128], index: 1, kind: input, shape index: {}]   ;;  %s907_s2 = inlined_call_operand.hbm [shape: f32[128,640], index: 2, kind: input, shape index: {}]   ;;  %s908_s3 = inlined_call_operand.hbm [shape: f32[8,640], index: 3, kind: output, shape index: {}]  }
   0x1   :  { %9 = vsyncpa [#allocation6], 0 }
   0x2   :  { %10 = vsyncpa [#allocation4], 0  ;;  %s796_s12 = smov [#allocation5]   ;;  %s702_s16 = scalar_lea.hbm %s906_s1, 2048 }
   0x3   :  { %s26_s13 = sshll.u32 %s796_s12, 4  ;;  %p703_p0 = scmp.ne.s32.totalorder %s906_s1, %s702_s16  ;;  %s27_s13 = int_to_ptr.vmem [resolvable:$true] %s26_s13 }
   0x4   :  { %p706_p1 = scmp.lt.u32.totalorder %s702_s16, %s906_s1 }
   0x6   :  { %p708_p2 = pnand %p706_p1, %p703_p0 }
   0x8   :  { %711 = shalt.err (!%p708_p2)
}
   0x9   :  { %s712_s21 = scalar_lea.vmem %s27_s13, 2048  ;;  %p717_p4 = scmp.lt.s32.totalorder %s27_s13, %s27_s13 }
   0xa   :  { %p713_p3 = scmp.ne.s32.totalorder %s27_s13, %s712_s21  ;;  %p718_p5 = scmp.lt.s32.totalorder %s712_s21, %s712_s21 }
   0xc   :  { %p719_p6 = por %p718_p5, %p717_p4 }
   0xe   :  { %p720_p7 = pnand %p719_p6, %p713_p3 }
  0x10   :  { %723 = shalt.err (!%p720_p7)
}
  0x11   :  { %s797_s22 = smov 128   ;;  %s798_s23 = smov 8  }
  0x12   :  { %32 = dma.hbm_to_vmem [thread:$0]  %s906_s1, 2048, %s27_s13, [#allocation6], %s797_s22, %s797_s22, %s798_s23  }
  0x13   :  { %s799_s26 = smov [#allocation2]   ;;  %s800_s28 = smov [#allocation7]  }
  0x14   :  { %s17_s27 = sshll.u32 %s799_s26, 4  ;;  %s38_s29 = sshll.u32 %s800_s28, 4  ;;  %s18_s27 = int_to_ptr.vmem [resolvable:$true] %s17_s27  ;;  %s39_s29 = int_to_ptr.vmem [resolvable:$true] %s38_s29 }
  0x15   :  { %s724_s5 = scalar_lea.hbm %s905_s0, 128 }
  0x16   :  { %p725_p8 = scmp.ne.s32.totalorder %s905_s0, %s724_s5  ;;  %p728_p9 = scmp.lt.u32.totalorder %s724_s5, %s905_s0 }
  0x18   :  { %p730_p10 = pnand %p728_p9, %p725_p8 }
  0x1a   :  { %733 = shalt.err (!%p730_p10)
}
  0x1b   :  { %s734_s1 = scalar_lea.vmem %s18_s27, 128  ;;  %p739_p12 = scmp.lt.s32.totalorder %s18_s27, %s18_s27 }
  0x1c   :  { %p735_p11 = scmp.ne.s32.totalorder %s18_s27, %s734_s1  ;;  %p740_p13 = scmp.lt.s32.totalorder %s734_s1, %s734_s1 }
  0x1e   :  { %p741_p0 = por %p740_p13, %p739_p12 }
  0x20   :  { %p742_p1 = pnand %p741_p0, %p735_p11 }
  0x22   :  { %745 = shalt.err (!%p742_p1)
}
  0x23   :  { %20 = dma.hbm_to_vmem [thread:$0]  %s905_s0, 128, %s18_s27, [#allocation3]  }
  0x24   :  { %s746_s14 = scalar_lea.hbm %s907_s2, 10240 }
  0x25   :  { %p747_p2 = scmp.ne.s32.totalorder %s907_s2, %s746_s14  ;;  %p750_p3 = scmp.lt.u32.totalorder %s746_s14, %s907_s2 }
  0x27   :  { %p752_p4 = pnand %p750_p3, %p747_p2 }
  0x29   :  { %755 = shalt.err (!%p752_p4)
}
  0x2a   :  { %s756_s19 = scalar_lea.vmem %s39_s29, 10240  ;;  %p761_p6 = scmp.lt.s32.totalorder %s39_s29, %s39_s29 }
  0x2b   :  { %p757_p5 = scmp.ne.s32.totalorder %s39_s29, %s756_s19  ;;  %p762_p7 = scmp.lt.s32.totalorder %s756_s19, %s756_s19 }
  0x2d   :  { %p763_p8 = por %p762_p7, %p761_p6 }
  0x2f   :  { %p764_p9 = pnand %p763_p8, %p757_p5 }
  0x31   :  { %767 = shalt.err (!%p764_p9)
}
  0x32   :  { %s801_s0 = smov 640   ;;  %s802_s20 = smov 40  }
  0x33   :  { %44 = dma.hbm_to_vmem [thread:$0]  %s907_s2, 10240, %s39_s29, [#allocation6], %s801_s0, %s801_s0, %s802_s20  }
  0x34   :  { %790 = dma.done.wait [#allocation3], 128  }
  0x35   :  { %791 = vsyncadd [#allocation3], 4294967168 }
  0x36   :  { %792 = dma.done.wait [#allocation6], 12288  }
  0x37   :  { %793 = vsyncadd [#allocation6], 4294955008  ;;  %v803_v0 = vmov 0.0|0.0   ;;  %vm804_vm0 = vmmov 0   ;;  %v805_v1 = vmov 0.0   ;;  %v55_v2 = vld [vmem:[#allocation5] sm:$0xff]  ;;  %v142_v27 = vlaneseq }
  0x38   :  { %575 = vmatprep.subr.bf16.mxu0 %v803_v0  ;;  %537 = vmatprep.mubr.msk.f32.mxu0 %vm804_vm0, %v805_v1  ;;  %v56_v3 = vld [vmem:[#allocation5 + $0x8] sm:$0xff]  ;;  %v57_v4 = vld [vmem:[#allocation5 + $0x10] sm:$0xff]  ;;  %v58_v6 = vld [vmem:[#allocation5 + $0x18] sm:$0xff]  ;;  %s806_s2 = smov [#allocation8]  }
  0x39   :  { %302 = vmatprep.mubr.f32.mxu1 %v805_v1  ;;  %v576_v5 = vpack.c.bf16 %v56_v3, %v55_v2  ;;  %v579_v7 = vpack.c.bf16 %v58_v6, %v57_v4  ;;  %v59_v8 = vld [vmem:[#allocation5 + $0x20] sm:$0xff]  ;;  %v60_v9 = vld [vmem:[#allocation5 + $0x28] sm:$0xff]  ;;  %v61_v11 = vld [vmem:[#allocation5 + $0x30] sm:$0xff]  ;;  %v143_v28 = vand.u32 127, %v142_v27  ;;  %s461_s23 = sshll.u32 %s806_s2, 4  ;;  %s462_s23 = int_to_ptr.vmem [resolvable:$true] %s461_s23 }
  0x3a   :  { %v582_v10 = vpack.c.bf16 %v60_v9, %v59_v8  ;;  %v62_v12 = vld [vmem:[#allocation5 + $0x38] sm:$0xff]  ;;  %v63_v14 = vld [vmem:[#allocation5 + $0x40] sm:$0xff]  ;;  %v64_v15 = vld [vmem:[#allocation5 + $0x48] sm:$0xff]  ;;  %s768_s24 = scalar_lea.vmem %s462_s23, 640  ;;  %p773_p11 = scmp.lt.s32.totalorder %s462_s23, %s462_s23 }
  0x3b   :  { %577 = vmatpush3.bf16.msra.mxu0 %v576_v5  ;;  %v585_v13 = vpack.c.bf16 %v62_v12, %v61_v11  ;;  %v588_v16 = vpack.c.bf16 %v64_v15, %v63_v14  ;;  %v65_v17 = vld [vmem:[#allocation5 + $0x50] sm:$0xff]  ;;  %v66_v18 = vld [vmem:[#allocation5 + $0x58] sm:$0xff]  ;;  %v67_v20 = vld [vmem:[#allocation5 + $0x60] sm:$0xff]  ;;  %vm144_vm1 = vcmp.ge.s32.totalorder %v143_v28, 16  ;;  %p769_p10 = scmp.ne.s32.totalorder %s462_s23, %s768_s24  ;;  %p774_p12 = scmp.lt.s32.totalorder %s768_s24, %s768_s24 }
  0x3c   :  { %578 = vmatprep.subr.bf16.mxu0 %v803_v0  ;;  %v591_v19 = vpack.c.bf16 %v66_v18, %v65_v17  ;;  %v68_v21 = vld [vmem:[#allocation5 + $0x68] sm:$0xff]  ;;  %v69_v23 = vld [vmem:[#allocation5 + $0x70] sm:$0xff]  ;;  %v70_v24 = vld [vmem:[#allocation5 + $0x78] sm:$0xff] }
  0x3d   :  { %v594_v22 = vpack.c.bf16 %v68_v21, %v67_v20  ;;  %v597_v25 = vpack.c.bf16 %v70_v24, %v69_v23  ;;  %v54_v26 = vld [vmem:[#allocation2] sm:$0xff]  ;;  %v159_v33 = vld [vmem:[#allocation7 + $0x8] sm:$0xff]  ;;  %v164_v34 = vld [vmem:[#allocation7 + $0x30] sm:$0xff]  ;;  %p775_p13 = por %p774_p12, %p773_p11 }
  0x3e   :  { %v158_v35 = vld [vmem:[#allocation7] sm:$0xff]  ;;  %v599_v36 = vpack.c.bf16 %v164_v34, %v159_v33  ;;  %v163_v37 = vld [vmem:[#allocation7 + $0x28] sm:$0xff]  ;;  %v161_v38 = vld [vmem:[#allocation7 + $0x18] sm:$0xff] }
  0x3f   :  { %580 = vmatpush3.bf16.msra.mxu0 %v579_v7  ;;  %v166_v39 = vld [vmem:[#allocation7 + $0x40] sm:$0xff]  ;;  %v601_v40 = vpack.c.bf16 %v163_v37, %v158_v35  ;;  %v160_v42 = vld [vmem:[#allocation7 + $0x10] sm:$0xff]  ;;  %v165_v43 = vld [vmem:[#allocation7 + $0x38] sm:$0xff]  ;;  %p776_p0 = pnand %p775_p13, %p769_p10 }
  0x40   :  { %581 = vmatprep.subr.bf16.mxu0 %v803_v0  ;;  %v631_v41 = vpack.c.bf16 %v166_v39, %v161_v38  ;;  %v169_v44 = vld [vmem:[#allocation7 + $0x58] sm:$0xff]  ;;  %600 = vmatprep.subr.bf16.mxu1 %v599_v36  ;;  %v633_v45 = vpack.c.bf16 %v165_v43, %v160_v42  ;;  %v174_v46 = vld [vmem:[#allocation7 + $0x80] sm:$0xff]  ;;  %v168_v47 = vld [vmem:[#allocation7 + $0x50] sm:$0xff] }
  0x41   :  { %v173_v48 = vld [vmem:[#allocation7 + $0x78] sm:$0xff]  ;;  %602 = vmatpush1.bf16.msra.mxu1 %v601_v40  ;;  %v603_v49 = vpack.c.bf16 %v174_v46, %v169_v44  ;;  %v171_v51 = vld [vmem:[#allocation7 + $0x68] sm:$0xff]  ;;  %v176_v52 = vld [vmem:[#allocation7 + $0x90] sm:$0xff] }
  0x42   :  { %v605_v50 = vpack.c.bf16 %v173_v48, %v168_v47  ;;  %v170_v53 = vld [vmem:[#allocation7 + $0x60] sm:$0xff]  ;;  %v635_v54 = vpack.c.bf16 %v176_v52, %v171_v51  ;;  %v175_v55 = vld [vmem:[#allocation7 + $0x88] sm:$0xff]  ;;  %v184_v57 = vld [vmem:[#allocation7 + $0xd0] sm:$0xff] }
  0x43   :  { %583 = vmatpush3.bf16.msra.mxu0 %v582_v10  ;;  %v179_v56 = vld [vmem:[#allocation7 + $0xa8] sm:$0xff]  ;;  %604 = vmatprep.subr.bf16.mxu1 %v603_v49  ;;  %v637_v58 = vpack.c.bf16 %v175_v55, %v170_v53  ;;  %v178_v60 = vld [vmem:[#allocation7 + $0xa0] sm:$0xff]  ;;  %v181_v62 = vld [vmem:[#allocation7 + $0xb8] sm:$0xff] }
  0x44   :  { %584 = vmatprep.subr.bf16.mxu0 %v803_v0  ;;  %v607_v59 = vpack.c.bf16 %v184_v57, %v179_v56  ;;  %v183_v61 = vld [vmem:[#allocation7 + $0xc8] sm:$0xff]  ;;  %v186_v63 = vld [vmem:[#allocation7 + $0xe0] sm:$0xff]  ;;  %v180_v2 = vld [vmem:[#allocation7 + $0xb0] sm:$0xff] }
  0x45   :  { %v185_v3 = vld [vmem:[#allocation7 + $0xd8] sm:$0xff]  ;;  %606 = vmatpush1.bf16.msra.mxu1 %v605_v50  ;;  %v609_v4 = vpack.c.bf16 %v183_v61, %v178_v60  ;;  %v639_v5 = vpack.c.bf16 %v186_v63, %v181_v62  ;;  %v194_v7 = vld [vmem:[#allocation7 + $0x120] sm:$0xff]  ;;  %v188_v8 = vld [vmem:[#allocation7 + $0xf0] sm:$0xff] }
  0x46   :  { %v189_v6 = vld [vmem:[#allocation7 + $0xf8] sm:$0xff]  ;;  %608 = vmatprep.subr.bf16.mxu1 %v607_v59  ;;  %v641_v9 = vpack.c.bf16 %v185_v3, %v180_v2  ;;  %v191_v12 = vld [vmem:[#allocation7 + $0x108] sm:$0xff]  ;;  %v190_v20 = vld [vmem:[#allocation7 + $0x100] sm:$0xff] }
  0x47   :  { %586 = vmatpush3.bf16.msra.mxu0 %v585_v13  ;;  %v611_v10 = vpack.c.bf16 %v194_v7, %v189_v6  ;;  %v193_v11 = vld [vmem:[#allocation7 + $0x118] sm:$0xff]  ;;  %v196_v13 = vld [vmem:[#allocation7 + $0x130] sm:$0xff]  ;;  %v195_v21 = vld [vmem:[#allocation7 + $0x128] sm:$0xff] }
  0x48   :  { %587 = vmatprep.subr.bf16.mxu0 %v803_v0  ;;  %v643_v14 = vpack.c.bf16 %v196_v13, %v191_v12  ;;  %v613_v15 = vpack.c.bf16 %v193_v11, %v188_v8  ;;  %v199_v23 = vld [vmem:[#allocation7 + $0x148] sm:$0xff]  ;;  %v204_v24 = vld [vmem:[#allocation7 + $0x170] sm:$0xff]  ;;  %v201_v28 = vld [vmem:[#allocation7 + $0x158] sm:$0xff] }
  0x49   :  { %610 = vmatpush1.bf16.msra.mxu1 %v609_v4  ;;  %v203_v27 = vld [vmem:[#allocation7 + $0x168] sm:$0xff]  ;;  %v209_v35 = vld [vmem:[#allocation7 + $0x198] sm:$0xff]  ;;  %v214_v36 = vld [vmem:[#allocation7 + $0x1c0] sm:$0xff] }
  0x4a   :  { %612 = vmatprep.subr.bf16.mxu1 %v611_v10  ;;  %v619_v37 = vpack.c.bf16 %v214_v36, %v209_v35  ;;  %v208_v38 = vld [vmem:[#allocation7 + $0x190] sm:$0xff]  ;;  %v213_v39 = vld [vmem:[#allocation7 + $0x1b8] sm:$0xff]  ;;  %v211_v40 = vld [vmem:[#allocation7 + $0x1a8] sm:$0xff] }
  0x4b   :  { %589 = vmatpush3.bf16.msra.mxu0 %v588_v16  ;;  %v216_v42 = vld [vmem:[#allocation7 + $0x1d0] sm:$0xff]  ;;  %v210_v43 = vld [vmem:[#allocation7 + $0x1a0] sm:$0xff]  ;;  %v215_v44 = vld [vmem:[#allocation7 + $0x1c8] sm:$0xff] }
  0x4c   :  { %590 = vmatprep.subr.bf16.mxu0 %v803_v0  ;;  %v653_v46 = vpack.c.bf16 %v215_v44, %v210_v43  ;;  %v219_v47 = vld [vmem:[#allocation7 + $0x1e8] sm:$0xff]  ;;  %v224_v48 = vld [vmem:[#allocation7 + $0x210] sm:$0xff]  ;;  %v218_v50 = vld [vmem:[#allocation7 + $0x1e0] sm:$0xff] }
  0x4d   :  { %614 = vmatpush1.bf16.msra.mxu1 %v613_v15  ;;  %v623_v49 = vpack.c.bf16 %v224_v48, %v219_v47  ;;  %v223_v51 = vld [vmem:[#allocation7 + $0x208] sm:$0xff]  ;;  %v221_v52 = vld [vmem:[#allocation7 + $0x1f8] sm:$0xff]  ;;  %v220_v55 = vld [vmem:[#allocation7 + $0x1f0] sm:$0xff] }
  0x4e   :  { %v625_v53 = vpack.c.bf16 %v223_v51, %v218_v50  ;;  %v225_v56 = vld [vmem:[#allocation7 + $0x218] sm:$0xff]  ;;  %v234_v60 = vld [vmem:[#allocation7 + $0x260] sm:$0xff]  ;;  %v228_v62 = vld [vmem:[#allocation7 + $0x230] sm:$0xff] }
  0x4f   :  { %592 = vmatpush3.bf16.msra.mxu0 %v591_v19  ;;  %v229_v59 = vld [vmem:[#allocation7 + $0x238] sm:$0xff]  ;;  %v231_v2 = vld [vmem:[#allocation7 + $0x248] sm:$0xff]  ;;  %v236_v4 = vld [vmem:[#allocation7 + $0x270] sm:$0xff] }
  0x50   :  { %593 = vmatprep.subr.bf16.mxu0 %v803_v0  ;;  %v627_v61 = vpack.c.bf16 %v234_v60, %v229_v59  ;;  %v233_v63 = vld [vmem:[#allocation7 + $0x258] sm:$0xff]  ;;  %v235_v6 = vld [vmem:[#allocation7 + $0x268] sm:$0xff]  ;;  %v659_v7 = vpack.c.bf16 %v236_v4, %v231_v2  ;;  %v162_v13 = vld [vmem:[#allocation7 + $0x20] sm:$0xff] }
  0x51   :  { %v629_v3 = vpack.c.bf16 %v233_v63, %v228_v62  ;;  %v232_v35 = vld [vmem:[#allocation7 + $0x250] sm:$0xff]  ;;  %v237_v36 = vld [vmem:[#allocation7 + $0x278] sm:$0xff] }
  0x53   :  { %595 = vmatpush3.bf16.msra.mxu0 %v594_v22  ;;  %v645_v22 = vpack.c.bf16 %v195_v21, %v190_v20  ;;  %v177_v20 = vld [vmem:[#allocation7 + $0x98] sm:$0xff] }
  0x54   :  { %596 = vmatprep.subr.bf16.mxu0 %v803_v0 }
  0x57   :  { %598 = vmatpush3.bf16.msra.mxu0 %v597_v25  ;;  %v615_v25 = vpack.c.bf16 %v204_v24, %v199_v23  ;;  %v187_v23 = vld [vmem:[#allocation7 + $0xe8] sm:$0xff] }
  0x58   :  { %632 = vmatprep.subr.bf16.mxu0 %v631_v41  ;;  %v621_v41 = vpack.c.bf16 %v213_v39, %v208_v38 }
  0x59   :  { %616 = vmatprep.subr.bf16.mxu1 %v615_v25  ;;  %v192_v25 = vld [vmem:[#allocation7 + $0x110] sm:$0xff] }
  0x5a   :  { %538 = vmatmul.mubr.f32.vlgmr.msra.gmra.mrb[0].mxu0 %v54_v26  ;;  %v198_v26 = vld [vmem:[#allocation7 + $0x140] sm:$0xff] }
  0x5b   :  { %373 = vmatprep.mubr.f32.mxu0 %v805_v1  ;;  %634 = vmatpush1.bf16.msra.mxu0 %v633_v45  ;;  %v651_v45 = vpack.c.bf16 %v216_v42, %v211_v40 }
  0x5c   :  { %636 = vmatprep.subr.bf16.mxu0 %v635_v54  ;;  %v226_v54 = vld [vmem:[#allocation7 + $0x220] sm:$0xff] }
  0x5d   :  { %v655_v57 = vpack.c.bf16 %v226_v54, %v221_v52 }
  0x5f   :  { %638 = vmatpush1.bf16.msra.mxu0 %v637_v58  ;;  %v657_v58 = vpack.c.bf16 %v225_v56, %v220_v55 }
  0x60   :  { %640 = vmatprep.subr.bf16.mxu0 %v639_v5  ;;  %v230_v5 = vld [vmem:[#allocation7 + $0x240] sm:$0xff] }
  0x61   :  { %v661_v8 = vpack.c.bf16 %v235_v6, %v230_v5 }
  0x63   :  { %642 = vmatpush1.bf16.msra.mxu0 %v641_v9 }
  0x64   :  { %644 = vmatprep.subr.bf16.mxu0 %v643_v14  ;;  %v167_v14 = vld [vmem:[#allocation7 + $0x48] sm:$0xff] }
  0x67   :  { %646 = vmatpush1.bf16.msra.mxu0 %v645_v22  ;;  %v182_v22 = vld [vmem:[#allocation7 + $0xc0] sm:$0xff] }
  0x68   :  { %v670_v24 = vpack.c.bf16 %v187_v23, %v182_v22 }
 0x12d   :  { %v137_v29 = vpop.f32.mrb[0].mxu0 }
 0x12e   :  { %v141_v30 = vmul.f32 0.2, %v137_v29  ;;  %v539_v31 = vpop.f32.mrb[1].mxu0  ;;  %v617_v29 = vpack.c.bf16 %v203_v27, %v198_v26  ;;  %v197_v26 = vld [vmem:[#allocation7 + $0x138] sm:$0xff]  ;;  %v202_v27 = vld [vmem:[#allocation7 + $0x160] sm:$0xff] }
 0x12f   :  { %v200_v31 = vld [vmem:[#allocation7 + $0x150] sm:$0xff] }
 0x130   :  { %v875_v32 = vsel %vm144_vm1, -1e+30, %v141_v30  ;;  %v206_v30 = vld [vmem:[#allocation7 + $0x180] sm:$0xff]  ;;  %618 = vmatpush1.bf16.msra.mxu1 %v617_v29 }
 0x131   :  { %146 = vmax.xlane.f32.xlu0 %v875_v32  ;;  %v647_v33 = vpack.c.bf16 %v206_v30, %v201_v28  ;;  %620 = vmatprep.subr.bf16.mxu1 %v619_v37  ;;  %v207_v28 = vld [vmem:[#allocation7 + $0x188] sm:$0xff]  ;;  %v217_v30 = vld [vmem:[#allocation7 + $0x1d8] sm:$0xff]  ;;  %v685_v37 = vpack.c.bf16 %v237_v36, %v232_v35 }
 0x132   :  { %v676_v29 = vpack.c.bf16 %v207_v28, %v202_v27 }
 0x133   :  { %648 = vmatprep.subr.bf16.mxu0 %v647_v33  ;;  %v227_v33 = vld [vmem:[#allocation7 + $0x228] sm:$0xff] }
 0x134   :  { %622 = vmatpush1.bf16.msra.mxu1 %v621_v41 }
 0x135   :  { %624 = vmatprep.subr.bf16.mxu1 %v623_v49 }
 0x138   :  { %626 = vmatpush1.bf16.msra.mxu1 %v625_v53 }
 0x139   :  { %628 = vmatprep.subr.bf16.mxu1 %v627_v61 }
 0x13c   :  { %630 = vmatpush1.bf16.msra.mxu1 %v629_v3 }
 0x13d   :  { %663 = vmatprep.subr.bf16.mxu1 %v803_v0 }
 0x1be   :  { %v147_v16 = vpop.xlane.xlu0 %146 }
 0x1bf   :  { %v148_v17 = vsub.f32 %v875_v32, %v147_v16  ;;  %v205_v32 = vld [vmem:[#allocation7 + $0x178] sm:$0xff]  ;;  %v664_v16 = vpack.c.bf16 %v167_v14, %v162_v13 }
 0x1c0   :  { %v649_v34 = vpack.c.bf16 %v205_v32, %v200_v31  ;;  %v222_v32 = vld [vmem:[#allocation7 + $0x200] sm:$0xff] }
 0x1c1   :  { %v149_v18 = vmul.f32 1.442695, %v148_v17 }
 0x1c2   :  { %650 = vmatpush1.bf16.msra.mxu0 %v649_v34  ;;  %v682_v34 = vpack.c.bf16 %v227_v33, %v222_v32 }
 0x1c3   :  { %698 = vpow2.f32 %v149_v18  ;;  %652 = vmatprep.subr.bf16.mxu0 %v651_v45  ;;  %v172_v18 = vld [vmem:[#allocation7 + $0x70] sm:$0xff] }
 0x1c4   :  { %v667_v21 = vpack.c.bf16 %v177_v20, %v172_v18 }
 0x1c6   :  { %654 = vmatpush1.bf16.msra.mxu0 %v653_v46 }
 0x1c7   :  { %656 = vmatprep.subr.bf16.mxu0 %v655_v57 }
 0x1ca   :  { %658 = vmatpush1.bf16.msra.mxu0 %v657_v58 }
 0x1cb   :  { %660 = vmatprep.subr.bf16.mxu0 %v659_v7 }
 0x1cd   :  { %v879_v19 = vpop.eup %698 }
 0x1ce   :  { %151 = vadd.xlane.f32.xlu0 %v879_v19  ;;  %662 = vmatpush1.bf16.msra.mxu0 %v661_v8 }
 0x25b   :  { %v152_v9 = vpop.xlane.xlu0 %151 }
 0x25c   :  { %700 = vrcp.f32 %v152_v9 }
 0x266   :  { %v701_v10 = vpop.eup %700 }
 0x267   :  { %v154_v11 = vmul.f32 %v701_v10, %v152_v9 }
 0x269   :  { %v155_v12 = vsub.f32 2.0, %v154_v11 }
 0x26b   :  { %v156_v15 = vmul.f32 %v701_v10, %v155_v12 }
 0x26d   :  { %v157_v17 = vmul.f32 %v879_v19, %v156_v15  ;;  %v673_v19 = vpack.c.bf16 %v197_v26, %v192_v25 }
 0x26f   :  { %303 = vmatmul.mubr.f32.vlgmr.msra.gmra.mrb[0].mxu1 %v157_v17  ;;  %374 = vmatmul.mubr.f32.vlgmr.msra.gmra.mrb[2].mxu0 %v157_v17 }
 0x270   :  { %665 = vmatpush3.bf16.msra.mxu1 %v664_v16  ;;  %572 = vmatprep.mubr.msk.f32.mxu1 %vm804_vm0, %v805_v1  ;;  %v212_v1 = vld [vmem:[#allocation7 + $0x1b0] sm:$0xff] }
 0x271   :  { %666 = vmatprep.subr.bf16.mxu1 %v803_v0  ;;  %v679_v31 = vpack.c.bf16 %v217_v30, %v212_v1 }
 0x274   :  { %668 = vmatpush3.bf16.msra.mxu1 %v667_v21 }
 0x275   :  { %669 = vmatprep.subr.bf16.mxu1 %v803_v0 }
 0x278   :  { %671 = vmatpush3.bf16.msra.mxu1 %v670_v24 }
 0x279   :  { %672 = vmatprep.subr.bf16.mxu1 %v803_v0 }
 0x27c   :  { %674 = vmatpush3.bf16.msra.mxu1 %v673_v19 }
 0x27d   :  { %675 = vmatprep.subr.bf16.mxu1 %v803_v0 }
 0x280   :  { %677 = vmatpush3.bf16.msra.mxu1 %v676_v29 }
 0x281   :  { %678 = vmatprep.subr.bf16.mxu1 %v803_v0 }
 0x284   :  { %680 = vmatpush3.bf16.msra.mxu1 %v679_v31 }
 0x285   :  { %681 = vmatprep.subr.bf16.mxu1 %v803_v0 }
 0x288   :  { %683 = vmatpush3.bf16.msra.mxu1 %v682_v34 }
 0x289   :  { %684 = vmatprep.subr.bf16.mxu1 %v803_v0 }
 0x28c   :  { %686 = vmatpush3.bf16.msra.mxu1 %v685_v37 }
 0x28f   :  { %573 = vmatmul.mubr.f32.vlgmr.msra.gmra.mrb[2].mxu1 %v157_v17 }
 0x342   :  { %v304_v38 = vpop.f32.mrb[0].mxu1  ;;  %v375_v39 = vpop.f32.mrb[2].mxu0 }
 0x343   :  { %450 = vst [vmem:[#allocation8] sm:$0xff] %v304_v38  ;;  %452 = vst [vmem:[#allocation8 + $0x10] sm:$0xff] %v375_v39  ;;  %v306_v40 = vpop.f32.mrb[1].mxu1  ;;  %v377_v41 = vpop.f32.mrb[3].mxu0 }
 0x344   :  { %451 = vst [vmem:[#allocation8 + $0x8] sm:$0xff] %v306_v40  ;;  %453 = vst [vmem:[#allocation8 + $0x18] sm:$0xff] %v377_v41 }
 0x362   :  { %v446_v42 = vpop.f32.mrb[2].mxu1 }
 0x363   :  { %454 = vst [vmem:[#allocation8 + $0x20] sm:$0xff] %v446_v42  ;;  %v574_v43 = vpop.f32.mrb[3].mxu1 }
 0x364   :  { %779 = shalt.err (!%p776_p0)
}
 0x365   :  { %s780_s27 = scalar_lea.hbm %s908_s3, 640 }
 0x366   :  { %p781_p1 = scmp.ne.s32.totalorder %s908_s3, %s780_s27  ;;  %p784_p2 = scmp.lt.u32.totalorder %s780_s27, %s908_s3 }
 0x368   :  { %p786_p3 = pnand %p784_p2, %p781_p1 }
 0x36a   :  { %789 = shalt.err (!%p786_p3)
}
 0x36b   :  { %464 = dma.vmem_to_hbm [thread:$0]  %s462_s23, 640, %s908_s3, [#allocation4]  }
 0x36c   :  { %794 = dma.done.wait [#allocation4], 640  }
 0x36d   :  { %795 = vsyncadd [#allocation4], 4294966656 }
 0x36e   :  { %468 = vsyncpa [#allocation3], 1 }
 0x36f   :  { %469 = vsyncpa [#allocation6], 1 }
 0x370   :  { %470 = vsyncpa [#allocation4], 1 }

</bundles_post_ra>
